<compile_context>
chip_gen: v6e
topology: v6e:2x2x1
jax: 0.10.0
libtpu: 0.0.40
codegen_flags: <defaults>
</compile_context>

<pallas_src>
import math

import jax
import jax.numpy as jnp
from jax import lax
from jax.experimental import pallas as pl
from jax.experimental.pallas import tpu as pltpu

NEG_INF = float(-1e30)  # large-negative mask value; exp() underflows to exactly 0
_VMEM_LIMIT_BYTES = 48 * 1024 * 1024  # > v5e 16MiB / v6e-v7x 32MiB scoped defaults, < v7x 64MiB physical


def _pick_tile(dim, candidates):
    """Largest candidate that evenly divides `dim`; fall back to the full dim."""
    for c in candidates:
        if dim >= c and dim % c == 0:
            return c
    return dim


# ----------------------------- tiled linear ---------------------------------

def pallas_linear(x2d, w, b, compute_dtype=jnp.bfloat16):
    """x2d: (M, K) @ w: (K, N) + b: (N,) -> (M, N), tiled with K-reduction."""
    M, K = x2d.shape
    K2, N = w.shape
    assert K == K2
    tm = _pick_tile(M, (512, 256, 128))
    tn = _pick_tile(N, (512, 256, 128))
    tk = _pick_tile(K, (512, 256, 128))
    grid = (M // tm, N // tn, K // tk)

    def kernel(x_ref, w_ref, b_ref, o_ref, acc_ref):
        k = pl.program_id(2)

        @pl.when(k == 0)
        def _init():
            acc_ref[...] = jnp.zeros_like(acc_ref)

        xv = x_ref[...]
        wv = w_ref[...]
        if compute_dtype is not None:
            xv = xv.astype(compute_dtype)
            wv = wv.astype(compute_dtype)
        acc_ref[...] += jnp.dot(xv, wv, preferred_element_type=jnp.float32)

        @pl.when(k == pl.num_programs(2) - 1)
        def _finalize():
            o_ref[...] = (acc_ref[...] + b_ref[...]).astype(o_ref.dtype)

    itemsize = jnp.dtype(x2d.dtype).itemsize
    cost = pl.CostEstimate(
        flops=2 * M * N * K,
        transcendentals=0,
        bytes_accessed=int((M * K * (N // tn) + K * N * (M // tm) + M * N + N) * itemsize),
    )

    return pl.pallas_call(
        kernel,
        out_shape=jax.ShapeDtypeStruct((M, N), x2d.dtype),
        grid=grid,
        in_specs=[
            pl.BlockSpec((tm, tk), lambda i, j, k: (i, k)),
            pl.BlockSpec((tk, tn), lambda i, j, k: (k, j)),
            pl.BlockSpec((1, tn), lambda i, j, k: (0, j)),
        ],
        out_specs=pl.BlockSpec((tm, tn), lambda i, j, k: (i, j)),
        scratch_shapes=[pltpu.VMEM((tm, tn), jnp.float32)],
        compiler_params=pltpu.CompilerParams(
            dimension_semantics=("parallel", "parallel", "arbitrary"),
            vmem_limit_bytes=_VMEM_LIMIT_BYTES,
        ),
        cost_estimate=cost,
    )(x2d, w, b.reshape(1, N))


# ----------------------- flash-style causal attention ------------------------

def pallas_flash_attention(qkv, n_head, compute_dtype=jnp.bfloat16):
    """qkv: (B, T, 3C) fused projection output -> y: (B, T, C).

    Heads stay as static column slices of the (B, T, C) layout (no head
    transposes); q/k/v are selected via the BlockSpec's last block index when C
    is 128-aligned, so no (B,T,C) slice copies are materialized in HBM.
    """
    B, T, C3 = qkv.shape
    assert C3 % 3 == 0
    C = C3 // 3
    H = n_head
    assert C % H == 0
    D = C // H
    scale = 1.0 / math.sqrt(D)

    # Tile sizes: large q tile (cuts KV re-streaming), tkv <= tq (tight causal skip,
    # smaller f32 score tiles).  Keep >= 2 blocks on the parallel axes for v7x megacore.
    tq = _pick_tile(T, (512, 256, 128))
    while B * (T // tq) < 2 and tq % 2 == 0 and (tq // 2) >= 128 and T % (tq // 2) == 0:
        tq //= 2
    tkv = min(tq, _pick_tile(T, (256, 128)))
    grid = (B, T // tq, T // tkv)

    # Smallest head-group whose lane width is a multiple of 128 (full-lane stores).
    grp = H
    for g in range(1, H + 1):
        if H % g == 0 and (g * D) % 128 == 0:
            grp = g
            break

    use_approx_recip = (compute_dtype is not None) and (
        jnp.dtype(compute_dtype) != jnp.dtype(jnp.float32))

    def kernel(q_ref, k_ref, v_ref, o_ref, m_ref, l_ref, acc_ref):
        qi = pl.program_id(1)
        ki = pl.program_id(2)
        nk = pl.num_programs(2)
        q_start = qi * tq
        kv_start = ki * tkv
        q_end = q_start + (tq - 1)
        kv_end = kv_start + (tkv - 1)

        @pl.when(ki == 0)
        def _init():
            m_ref[...] = jnp.full_like(m_ref, NEG_INF)
            l_ref[...] = jnp.zeros_like(l_ref)
            acc_ref[...] = jnp.zeros_like(acc_ref)

        def process(apply_mask):
            if apply_mask:
                row = q_start + lax.broadcasted_iota(jnp.int32, (tq, tkv), 0)
                col = kv_start + lax.broadcasted_iota(jnp.int32, (tq, tkv), 1)
                causal = col <= row
            m_all = m_ref[...]                        # (tq, H) single load
            l_all = l_ref[...]
            m_cols, l_cols, pv_parts, alpha_parts = [], [], [], []
            for h in range(H):                        # static head loop; columns h*D:(h+1)*D
                lo, hi = h * D, (h + 1) * D
                q_h = q_ref[0, :, lo:hi] * scale      # pre-scale q (tq*D vs tq*tkv muls)
                k_h = k_ref[0, :, lo:hi]
                v_h = v_ref[0, :, lo:hi]
                if compute_dtype is not None:
                    q_h = q_h.astype(compute_dtype)
                    k_h = k_h.astype(compute_dtype)
                    v_h = v_h.astype(compute_dtype)
                # contract D axes directly (no materialized k.T); f32 accumulate on MXU
                s = lax.dot_general(
                    q_h, k_h,
                    dimension_numbers=(((1,), (1,)), ((), ())),
                    preferred_element_type=jnp.float32,
                )                                     # (tq, tkv), f32
                if apply_mask:
                    s = jnp.where(causal, s, NEG_INF)
                m_prev = m_all[:, h:h + 1]            # (tq, 1)
                l_prev = l_all[:, h:h + 1]
                m_new = jnp.maximum(m_prev, jnp.max(s, axis=-1, keepdims=True))
                alpha = jnp.exp(m_prev - m_new)
                p = jnp.exp(s - m_new)                # (tq, tkv), f32
                m_cols.append(m_new)
                l_cols.append(alpha * l_prev + jnp.sum(p, axis=-1, keepdims=True))
                pv_parts.append(jnp.dot(p.astype(v_h.dtype), v_h,
                                        preferred_element_type=jnp.float32))  # (tq, D)
                alpha_parts.append(jnp.broadcast_to(alpha, (tq, D)))

            # One store per kv step for the stats instead of H column RMWs.
            m_ref[...] = m_cols[0] if H == 1 else jnp.concatenate(m_cols, axis=-1)
            l_ref[...] = l_cols[0] if H == 1 else jnp.concatenate(l_cols, axis=-1)

            # Lane-dense accumulator update: one full-lane store per head group.
            for g0 in range(0, H, grp):
                lo, hi = g0 * D, (g0 + grp) * D
                if grp == 1:
                    pv_g, a_g = pv_parts[g0], alpha_parts[g0]
                else:
                    pv_g = jnp.concatenate(pv_parts[g0:g0 + grp], axis=-1)
                    a_g = jnp.concatenate(alpha_parts[g0:g0 + grp], axis=-1)
                acc_ref[:, lo:hi] = a_g * acc_ref[:, lo:hi] + pv_g

        # Classify this KV block relative to the causal diagonal.
        is_skip = kv_start > q_end          # fully masked: no compute (DMA also skipped via clamp)
        is_full = kv_end <= q_start         # fully visible: no mask needed
        is_diag = jnp.logical_not(is_skip) & jnp.logical_not(is_full)

        @pl.when(is_full)
        def _full():
            process(apply_mask=False)

        @pl.when(is_diag)
        def _diag():
            process(apply_mask=True)

        @pl.when(ki == nk - 1)
        def _finalize():
            # One reciprocal over (tq, H) sums; EUP fast path when running bf16.
            inv_l = pl.reciprocal(l_ref[...], approx=use_approx_recip)   # (tq, H)
            parts = [jnp.broadcast_to(inv_l[:, h:h + 1], (tq, D)) for h in range(H)]
            inv_full = parts[0] if H == 1 else jnp.concatenate(parts, axis=-1)
            o_ref[0] = (acc_ref[...] * inv_full).astype(o_ref.dtype)     # lane-dense store

        del v_ref  # (referenced inside process via closure)

    # KV index clamp: blocks entirely above the causal diagonal repeat the last
    # visible block index, so Pallas does not re-issue their DMA.
    def _kv_block(qi, ki):
        last_visible = (qi * tq + tq - 1) // tkv
        return jnp.minimum(ki, last_visible)

    fused = (C % 128 == 0)
    if fused:
        q_in, k_in, v_in = qkv, qkv, qkv
        q_spec = pl.BlockSpec((1, tq, C), lambda b, qi, ki: (b, qi, 0))
        k_spec = pl.BlockSpec((1, tkv, C), lambda b, qi, ki: (b, _kv_block(qi, ki), 1))
        v_spec = pl.BlockSpec((1, tkv, C), lambda b, qi, ki: (b, _kv_block(qi, ki), 2))
    else:
        # Fallback for C not 128-aligned (tiny test shapes): slice q/k/v outside.
        q_in = qkv[:, :, :C]
        k_in = qkv[:, :, C:2 * C]
        v_in = qkv[:, :, 2 * C:]
        q_spec = pl.BlockSpec((1, tq, C), lambda b, qi, ki: (b, qi, 0))
        k_spec = pl.BlockSpec((1, tkv, C), lambda b, qi, ki: (b, _kv_block(qi, ki), 0))
        v_spec = pl.BlockSpec((1, tkv, C), lambda b, qi, ki: (b, _kv_block(qi, ki), 0))

    itemsize = jnp.dtype(qkv.dtype).itemsize
    n_q_tiles = T // tq
    # q read + y write + causally-skipped K/V re-streamed once per q tile (~T/2 each).
    bytes_accessed = itemsize * (2 * B * T * C + B * T * C * max(n_q_tiles, 1))
    cost = pl.CostEstimate(
        flops=int(4 * B * H * T * T * D) // 2,        # causal halves the work
        transcendentals=int(B * H * T * T) // 2,
        bytes_accessed=int(bytes_accessed),
    )

    return pl.pallas_call(
        kernel,
        out_shape=jax.ShapeDtypeStruct((B, T, C), qkv.dtype),
        grid=grid,
        in_specs=[q_spec, k_spec, v_spec],
        out_specs=pl.BlockSpec((1, tq, C), lambda b, qi, ki: (b, qi, 0)),
        scratch_shapes=[
            pltpu.VMEM((tq, H), jnp.float32),   # running max per head
            pltpu.VMEM((tq, H), jnp.float32),   # running sum per head
            pltpu.VMEM((tq, C), jnp.float32),   # output accumulator
        ],
        compiler_params=pltpu.CompilerParams(
            dimension_semantics=("parallel", "parallel", "arbitrary"),
            vmem_limit_bytes=_VMEM_LIMIT_BYTES,
        ),
        cost_estimate=cost,
    )(q_in, k_in, v_in)


# ------------------------------- forward pass --------------------------------

def causal_self_attention(x, params, n_head, compute_dtype=jnp.bfloat16):
    """Forward pass equivalent to the PyTorch CausalSelfAttention (eval mode)."""
    B, T, C = x.shape

    # c_attn: (B*T, C) @ (C, 3C) + bias  (tiled Pallas matmul, bf16 MXU operands)
    qkv = pallas_linear(x.reshape(B * T, C), params["w_attn"], params["b_attn"],
                        compute_dtype)
    qkv = qkv.reshape(B, T, 3 * C)

    # flash-style causal attention directly on the fused qkv (no slice copies,
    # no head transposes)
    y = pallas_flash_attention(qkv, n_head, compute_dtype)   # (B, T, C)

    # c_proj
    y = pallas_linear(y.reshape(B * T, C), params["w_proj"], params["b_proj"],
                      compute_dtype)
    return y.reshape(B, T, C)
    # attn_dropout / resid_dropout are identity at inference (p = 0).


# ---------------------------- reference (pure JAX) ---------------------------

def reference_forward(x, params, n_head):
    B, T, C = x.shape
    D = C // n_head
    qkv = x @ params["w_attn"] + params["b_attn"]
    q, k, v = jnp.split(qkv, 3, axis=2)
    q = q.reshape(B, T, n_head, D).transpose(0, 2, 1, 3)
    k = k.reshape(B, T, n_head, D).transpose(0, 2, 1, 3)
    v = v.reshape(B, T, n_head, D).transpose(0, 2, 1, 3)
    att = jnp.einsum("bhqd,bhkd->bhqk", q, k) / math.sqrt(D)
    mask = jnp.tril(jnp.ones((T, T), dtype=bool))
    att = jnp.where(mask[None, None], att, -jnp.inf)
    att = jax.nn.softmax(att, axis=-1)
    y = jnp.einsum("bhqk,bhkd->bhqd", att, v)
    y = y.transpose(0, 2, 1, 3).reshape(B, T, C)
    return y @ params["w_proj"] + params["b_proj"]


# ----------------------------------- main ------------------------------------

if __name__ == "__main__":
    def make_params(key, C):
        kwa, kba, kwp, kbp = jax.random.split(key, 4)
        return {
            "w_attn": jax.random.normal(kwa, (C, 3 * C), jnp.float32) * 0.02,
            "b_attn": jax.random.normal(kba, (3 * C,), jnp.float32) * 0.02,
            "w_proj": jax.random.normal(kwp, (C, C), jnp.float32) * 0.02,
            "b_proj": jax.random.normal(kbp, (C,), jnp.float32) * 0.02,
        }

    key = jax.random.PRNGKey(0)
    k1, k2, k3, k4 = jax.random.split(key, 4)

    # Small config (full-array blocks; exercises the non-128-aligned fallback path).
    B, T, C, H = 2, 8, 32, 4
    x = jax.random.normal(k1, (B, T, C), dtype=jnp.float32)
    params = make_params(k2, C)
    y32 = jax.block_until_ready(
        causal_self_attention(x, params, n_head=H, compute_dtype=jnp.float32))
    y_ref = reference_forward(x, params, n_head=H)
    assert y32.shape == (B, T, C)
    assert jnp.allclose(y32, y_ref, atol=1e-5, rtol=1e-5), "small-config f32 mismatch"
    ybf = jax.block_until_ready(causal_self_attention(x, params, n_head=H))  # bf16 default
    assert jnp.allclose(ybf, y_ref, atol=5e-2, rtol=5e-2), "small-config bf16 mismatch"

    # Larger config exercising the fused-qkv BlockSpec path, multi-block flash grid,
    # causal KV-DMA clamping, head-group lane-dense stores, and tiled linears.
    B2, T2, C2, H2 = 1, 1024, 256, 4
    x2 = jax.random.normal(k3, (B2, T2, C2), dtype=jnp.float32)
    params2 = make_params(k4, C2)
    y2_ref = reference_forward(x2, params2, n_head=H2)
    y2_32 = jax.block_until_ready(
        causal_self_attention(x2, params2, n_head=H2, compute_dtype=jnp.float32))
    assert jnp.allclose(y2_32, y2_ref, atol=1e-4, rtol=1e-4), "large-config f32 mismatch"
    y2_bf = jax.block_until_ready(causal_self_attention(x2, params2, n_head=H2))
    assert jnp.allclose(y2_bf, y2_ref, atol=5e-2, rtol=5e-2), "large-config bf16 mismatch"

    print("KERNEL_OK")
</pallas_src>

<mosaic_0001>
module attributes {stable_mosaic.version = 11 : i64} {
  func.func @kernel(%arg0: i32, %arg1: i32, %arg2: i32, %arg3: memref<16x32xf32, #tpu.memory_space<vmem>>, %arg4: memref<32x96xf32, #tpu.memory_space<vmem>>, %arg5: memref<1x96xf32, #tpu.memory_space<vmem>>, %arg6: memref<16x96xf32, #tpu.memory_space<vmem>>, %arg7: memref<16x96xf32, #tpu.memory_space<vmem>>) attributes {dimension_semantics = [#tpu.dimension_semantics<parallel>, #tpu.dimension_semantics<parallel>, #tpu.dimension_semantics<arbitrary>], iteration_bounds = array<i64: 1, 1, 1>, scalar_prefetch = 0 : i64, scratch_operands = 1 : i64, tpu.core_type = #tpu.core_type<tc>, window_params = [{transform_indices = @transform_0, window_bounds = array<i64: 16, 32>}, {transform_indices = @transform_1, window_bounds = array<i64: 32, 96>}, {transform_indices = @transform_2, window_bounds = array<i64: 1, 96>}, {transform_indices = @transform_3, window_bounds = array<i64: 16, 96>}]} {
    %c0_i32 = arith.constant 0 : i32
    %0 = arith.cmpi eq, %arg2, %c0_i32 : i32
    %1 = arith.extui %0 : i1 to i32
    %c0_i32_0 = arith.constant 0 : i32
    %2 = arith.cmpi ne, %1, %c0_i32_0 : i32
    scf.if %2 {
      %cst_10 = arith.constant 0.000000e+00 : f32
      %12 = vector.broadcast %cst_10 : f32 to vector<16x96xf32>
      %c0_11 = arith.constant 0 : index
      %c0_12 = arith.constant 0 : index
      %13 = vector.load %arg7[%c0_11, %c0_12] : memref<16x96xf32, #tpu.memory_space<vmem>>, vector<16x96xf32>
      tpu.vector_store %arg7[%c0_11, %c0_12], %12 {strides = array<i32>} : memref<16x96xf32, #tpu.memory_space<vmem>>, vector<16x96xf32>,
    } else {
    }
    %c0 = arith.constant 0 : index
    %c0_1 = arith.constant 0 : index
    %3 = vector.load %arg3[%c0, %c0_1] : memref<16x32xf32, #tpu.memory_space<vmem>>, vector<16x32xf32>
    %c0_2 = arith.constant 0 : index
    %c0_3 = arith.constant 0 : index
    %4 = vector.load %arg4[%c0_2, %c0_3] : memref<32x96xf32, #tpu.memory_space<vmem>>, vector<32x96xf32>
    %c0_4 = arith.constant 0 : index
    %c0_5 = arith.constant 0 : index
    %5 = vector.load %arg7[%c0_4, %c0_5] : memref<16x96xf32, #tpu.memory_space<vmem>>, vector<16x96xf32>
    %cst = arith.constant dense<0.000000e+00> : vector<16x96xf32>
    %6 = tpu.matmul %3, %4, %cst {dimension_numbers = #tpu.dot_dimension_numbers<[1], [0], [0], [1], [0, 0, 1, 1], [], []>} : vector<16x32xf32>, vector<32x96xf32>, vector<16x96xf32> -> vector<16x96xf32>
    %7 = arith.addf %5, %6 : vector<16x96xf32>
    %c0_6 = arith.constant 0 : index
    %c0_7 = arith.constant 0 : index
    %8 = vector.load %arg7[%c0_6, %c0_7] : memref<16x96xf32, #tpu.memory_space<vmem>>, vector<16x96xf32>
    tpu.vector_store %arg7[%c0_6, %c0_7], %7 {strides = array<i32>} : memref<16x96xf32, #tpu.memory_space<vmem>>, vector<16x96xf32>,
    %c0_i32_8 = arith.constant 0 : i32
    %9 = arith.cmpi eq, %arg2, %c0_i32_8 : i32
    %10 = arith.extui %9 : i1 to i32
    %c0_i32_9 = arith.constant 0 : i32
    %11 = arith.cmpi ne, %10, %c0_i32_9 : i32
    scf.if %11 {
      %c0_10 = arith.constant 0 : index
      %c0_11 = arith.constant 0 : index
      %12 = vector.load %arg7[%c0_10, %c0_11] : memref<16x96xf32, #tpu.memory_space<vmem>>, vector<16x96xf32>
      %c0_12 = arith.constant 0 : index
      %c0_13 = arith.constant 0 : index
      %13 = vector.load %arg5[%c0_12, %c0_13] : memref<1x96xf32, #tpu.memory_space<vmem>>, vector<1x96xf32>
      %14 = vector.broadcast %13 : vector<1x96xf32> to vector<16x96xf32>
      %15 = arith.addf %12, %14 : vector<16x96xf32>
      %c0_14 = arith.constant 0 : index
      %c0_15 = arith.constant 0 : index
      %16 = vector.load %arg6[%c0_14, %c0_15] : memref<16x96xf32, #tpu.memory_space<vmem>>, vector<16x96xf32>
      tpu.vector_store %arg6[%c0_14, %c0_15], %15 {strides = array<i32>} : memref<16x96xf32, #tpu.memory_space<vmem>>, vector<16x96xf32>,
    } else {
    }
    return
  }
  func.func @transform_0(%arg0: i32, %arg1: i32, %arg2: i32) -> (i32, i32) {
    %c0_i32 = arith.constant 0 : i32
    return %arg0, %arg2 : i32, i32
  }
  func.func @transform_1(%arg0: i32, %arg1: i32, %arg2: i32) -> (i32, i32) {
    %c0_i32 = arith.constant 0 : i32
    return %arg2, %arg1 : i32, i32
  }
  func.func @transform_2(%arg0: i32, %arg1: i32, %arg2: i32) -> (i32, i32) {
    %c0_i32 = arith.constant 0 : i32
    %c0_i32_0 = arith.constant 0 : i32
    return %c0_i32, %arg1 : i32, i32
  }
  func.func @transform_3(%arg0: i32, %arg1: i32, %arg2: i32) -> (i32, i32) {
    %c0_i32 = arith.constant 0 : i32
    return %arg0, %arg1 : i32, i32
  }
}

</mosaic_0001>

<bundles_post_ra>
// kernel: tpu_custom_call.1
= control target key start
LH: loop header
LB: loop body
LE: loop exit
PB: predicated region body
PF: predicated region fallthrough
CT: control target
= control target key end

     0   :  { %8 = vsyncpa [#allocation4], 0  ;;  %s326_s0 = inlined_call_operand.hbm [shape: f32[16,32], index: 0, kind: input, shape index: {}]   ;;  %s327_s1 = inlined_call_operand.hbm [shape: f32[32,96], index: 1, kind: input, shape index: {}]   ;;  %s328_s2 = inlined_call_operand.vmem [shape: f32[1,96], index: 2, kind: input, shape index: {}]   ;;  %s329_s3 = inlined_call_operand.hbm [shape: f32[16,96], index: 3, kind: output, shape index: {}]  }
   0x1   :  { %9 = vsyncpa [#allocation7], 0 }
   0x2   :  { %10 = vsyncpa [#allocation5], 0  ;;  %s271_s12 = smov [#allocation3]  }
   0x3   :  { %s16_s13 = sshll.u32 %s271_s12, 4  ;;  %s17_s13 = int_to_ptr.vmem [resolvable:$true] %s16_s13 }
   0x4   :  { %s213_s14 = scalar_lea.vmem %s17_s13, 256  ;;  %p218_p1 = scmp.lt.s32.totalorder %s17_s13, %s17_s13 }
   0x5   :  { %p214_p0 = scmp.ne.s32.totalorder %s17_s13, %s213_s14  ;;  %p219_p2 = scmp.lt.s32.totalorder %s213_s14, %s213_s14 }
   0x7   :  { %p220_p3 = por %p219_p2, %p218_p1 }
   0x9   :  { %p221_p4 = pnand %p220_p3, %p214_p0 }
   0xb   :  { %224 = shalt.err (!%p221_p4)
}
   0xc   :  { %s272_s15 = smov 128   ;;  %s273_s16 = smov 8  }
   0xd   :  { %22 = dma.hbm_to_vmem [thread:$0]  %s326_s0, 256, %s17_s13, [#allocation4], %s272_s15, %s272_s15, %s273_s16  }
   0xe   :  { %s274_s19 = smov [#allocation6]  }
   0xf   :  { %s28_s20 = sshll.u32 %s274_s19, 4  ;;  %s29_s20 = int_to_ptr.vmem [resolvable:$true] %s28_s20 }
  0x10   :  { %s233_s21 = scalar_lea.vmem %s29_s20, 512  ;;  %p238_p6 = scmp.lt.s32.totalorder %s29_s20, %s29_s20 }
  0x11   :  { %p234_p5 = scmp.ne.s32.totalorder %s29_s20, %s233_s21  ;;  %p239_p7 = scmp.lt.s32.totalorder %s233_s21, %s233_s21 }
  0x13   :  { %p240_p8 = por %p239_p7, %p238_p6 }
  0x15   :  { %p241_p9 = pnand %p240_p8, %p234_p5 }
  0x17   :  { %244 = shalt.err (!%p241_p9)
}
  0x18   :  { %34 = dma.hbm_to_vmem [thread:$0]  %s327_s1, 512, %s29_s20, [#allocation7], %s272_s15, %s272_s15, %s273_s16  }
  0x19   :  { %265 = dma.done.wait [#allocation4], 256  }
  0x1a   :  { %266 = vsyncadd [#allocation4], 4294967040 }
  0x1b   :  { %267 = dma.done.wait [#allocation7], 512  }
  0x1c   :  { %268 = vsyncadd [#allocation7], 4294966784  ;;  %vm47_vm0 = vcmask 785408   ;;  %v275_v0 = vmov 0.0   ;;  %vm58_vm1 = vcmask 261120   ;;  %v55_v1 = vld [vmem:[#allocation6 + $0x18] sm:$0xff] }
  0x1d   :  { %49 = vst.msk [vmem:[#allocation2 + $0x8] sm:$0xff] %vm47_vm0, %v275_v0  ;;  %48 = vst.msk [vmem:[#allocation2] sm:$0xff] %vm47_vm0, %v275_v0  ;;  %v54_v2 = vld [vmem:[#allocation6 + $0x10] sm:$0xff]  ;;  %188 = vmatprep.subr.mxu0 %v55_v1  ;;  %v53_v4 = vld [vmem:[#allocation6 + $0x8] sm:$0xff]  ;;  %s276_s24 = smov [#allocation8]  }
  0x1e   :  { %v50_v3 = vld [vmem:[#allocation3] sm:$0xff]  ;;  %189 = vmatpush3.msra.mxu0 %v55_v1  ;;  %v52_v5 = vld [vmem:[#allocation6] sm:$0xff]  ;;  %v51_v6 = vld [vmem:[#allocation3 + $0x8] sm:$0xff]  ;;  %s166_s25 = sshll.u32 %s276_s24, 4  ;;  %s167_s25 = int_to_ptr.vmem [resolvable:$true] %s166_s25 }
  0x1f   :  { %196 = vmatprep.mubr.msk.f32.mxu0 %vm58_vm1, %v50_v3  ;;  %190 = vmatprep.subr.mxu0 %v54_v2  ;;  %v181_v13 = vld [vmem:[%s328_s2] ss:$0 sm:$0xff]  ;;  %s245_s26 = scalar_lea.vmem %s167_s25, 256  ;;  %p250_p11 = scmp.lt.s32.totalorder %s167_s25, %s167_s25 }
  0x20   :  { %191 = vmatpush3.msra.mxu0 %v54_v2  ;;  %p246_p10 = scmp.ne.s32.totalorder %s167_s25, %s245_s26  ;;  %p251_p12 = scmp.lt.s32.totalorder %s245_s26, %s245_s26 }
  0x21   :  { %192 = vmatprep.subr.mxu0 %v53_v4 }
  0x22   :  { %193 = vmatpush3.msra.mxu0 %v53_v4  ;;  %p252_p13 = por %p251_p12, %p250_p11 }
  0x23   :  { %194 = vmatprep.subr.mxu0 %v52_v5 }
  0x24   :  { %195 = vmatpush3.msra.mxu0 %v52_v5  ;;  %v57_v7 = vld [vmem:[#allocation2 + $0x8] sm:$0xff]  ;;  %v56_v9 = vld [vmem:[#allocation2] sm:$0xff]  ;;  %p253_p0 = pnand %p252_p13, %p246_p10 }
  0x25   :  { %197 = vmatmul.mubr.msk.f32.vlgmr.msra.gmra.mxu0 %vm58_vm1, %v51_v6 }
  0xe5   :  { %v198_v8 = vpop.f32.mrf.mxu0 }
  0xe6   :  { %v141_v10 = vadd.f32 %v198_v8, %v57_v7 }
  0xe7   :  { %v131_v11 = vpop.f32.mrf.mxu0 }
  0xe8   :  { %144 = vst.msk [vmem:[#allocation2 + $0x8] sm:$0xff] %vm47_vm0, %v141_v10  ;;  %v140_v12 = vadd.f32 %v131_v11, %v56_v9 }
  0xea   :  { %143 = vst.msk [vmem:[#allocation2] sm:$0xff] %vm47_vm0, %v140_v12 }
  0xef   :  { %v149_v14 = vld [vmem:[#allocation2 + $0x8] sm:$0xff] }
  0xf0   :  { %v158_v15 = vadd.f32 %v181_v13, %v149_v14 }
  0xf1   :  { %v148_v16 = vld [vmem:[#allocation2] sm:$0xff] }
  0xf2   :  { %v157_v17 = vadd.f32 %v181_v13, %v148_v16  ;;  %160 = vst.msk [vmem:[#allocation8 + $0x8] sm:$0xff] %vm47_vm0, %v158_v15 }
  0xf4   :  { %159 = vst.msk [vmem:[#allocation8] sm:$0xff] %vm47_vm0, %v157_v17 }
  0xf5   :  { %256 = shalt.err (!%p253_p0)
}
  0xf6   :  { %172 = dma.vmem_to_hbm [thread:$0]  %s167_s25, 256, %s329_s3, [#allocation5], %s272_s15, %s272_s15, %s273_s16  }
  0xf7   :  { %269 = dma.done.wait [#allocation5], 256  }
  0xf8   :  { %270 = vsyncadd [#allocation5], 4294967040 }
  0xf9   :  { %176 = vsyncpa [#allocation4], 1 }
  0xfa   :  { %177 = vsyncpa [#allocation7], 1 }
  0xfb   :  { %178 = vsyncpa [#allocation5], 1 }

</bundles_post_ra>
